<compile_context>
chip_gen: v7x
topology: tpu7x:2x2x1
jax: 0.10.0
libtpu: 0.0.40
codegen_flags: <defaults>
</compile_context>

<pallas_src>
import functools

import jax
import jax.numpy as jnp
from jax.experimental import pallas as pl
from jax.experimental.pallas import tpu as pltpu


def _round_up(x, m):
    return ((x + m - 1) // m) * m


def _pad_rows(x, multiple):
    pad = (-x.shape[0]) % multiple
    if pad:
        x = jnp.pad(x, ((0, pad), (0, 0)))
    return x


def _vmem_capacity_bytes():
    try:
        return int(pltpu.get_tpu_info().vmem_capacity_bytes)
    except Exception:
        return 64 * 1024 * 1024          # conservative (v7x-sized) fallback


# ------------------------------ dense (xg1) GEMM ------------------------------
def _dense_kernel(x_ref, w_ref, b_ref, o_ref):
    o_ref[...] = (jnp.dot(x_ref[...], w_ref[...],
                          preferred_element_type=jnp.float32)
                  + b_ref[...]).astype(o_ref.dtype)


def _dense(x, w, b, *, block_m, block_n, out_dtype, single_buffer, vmem_limit):
    """y = x @ w + b, row (and column) tiled; bf16 operands, f32 accumulate."""
    m0, k = x.shape
    n = w.shape[1]
    block_n = min(block_n, n)
    if n % block_n != 0:
        block_n = n
    block_m = int(min(block_m, _round_up(m0, 8)))
    x = _pad_rows(x, block_m)
    m = x.shape[0]
    n_blocks = n // block_n
    w_const = single_buffer and n_blocks == 1      # single-buffer only if constant

    def wspec(shape, imap):
        if w_const:
            return pl.BlockSpec(shape, imap, pipeline_mode=pl.Buffered(1))
        return pl.BlockSpec(shape, imap)

    y = pl.pallas_call(
        _dense_kernel,
        out_shape=jax.ShapeDtypeStruct((m, n), out_dtype),
        grid_spec=pltpu.PrefetchScalarGridSpec(
            num_scalar_prefetch=0,
            grid=(m // block_m, n_blocks),
            in_specs=[pl.BlockSpec((block_m, k), lambda i, j: (i, 0)),
                      wspec((k, block_n), lambda i, j: (0, j)),
                      wspec((1, block_n), lambda i, j: (0, j))],
            out_specs=pl.BlockSpec((block_m, block_n), lambda i, j: (i, j)),
        ),
        compiler_params=pltpu.CompilerParams(
            dimension_semantics=("parallel", "parallel"),
            vmem_limit_bytes=vmem_limit),
    )(x, w, b)
    return y[:m0]


# ---------------------- fused LSTM recurrence + epilogue ----------------------
def _lstm_fused_kernel(*refs, hidden_p, batch, t_chunk, head):
    """Sequential LSTM recurrence over one time chunk + fused epilogue GEMM.

    refs (head=False): xg, whh, w_post, b_post, out, hbuf, h, c
    refs (head=True):  xg, whh, wl1, bl1, wl2, bl2, out, hbuf, h, c

    xg:   (t_chunk*Bp, 4*Hp) bf16  precomputed input gates (gate-lane-padded)
    whh:  (Hp, 4*Hp)         bf16  recurrent weights (gate-lane-padded)
    out:  (t_chunk*Bp, N)          next-stage xg (bf16) or head output (f32)
    hbuf: (t_chunk*Bp, Hp)   bf16  scratch: hidden states of this chunk
    h,c:  (Bp, Hp)           f32   scratch: state carried across chunks
    """
    if head:
        (xg_ref, whh_ref, w1_ref, b1_ref, w2_ref, b2_ref,
         out_ref, hbuf_ref, h_ref, c_ref) = refs
    else:
        (xg_ref, whh_ref, wp_ref, bp_ref,
         out_ref, hbuf_ref, h_ref, c_ref) = refs
    Hp, Bp = hidden_p, batch

    @pl.when(pl.program_id(0) == 0)
    def _init():
        h_ref[...] = jnp.zeros_like(h_ref)
        c_ref[...] = jnp.zeros_like(c_ref)

    whh = whh_ref[...]                     # hoist the weight load out of the loop

    # NOTE: at Bp=8 this (Bp,Hp)@(Hp,4Hp) dot is latency-bound, not MXU-bound;
    # the win here is keeping the serial chain short (lane-aligned gates, no
    # relayouts), not MXU throughput.
    def step(t, carry):
        h, c = carry                                       # f32 state
        row = pl.multiple_of(t * Bp, 8)
        xg_t = xg_ref[pl.ds(row, Bp), :].astype(jnp.float32)
        gates = xg_t + jnp.dot(h.astype(jnp.bfloat16), whh,
                               preferred_element_type=jnp.float32)
        # PyTorch gate order i, f, g, o; each slice is a full-128-lane view.
        i_g = jax.nn.sigmoid(gates[:, 0:Hp])
        f_g = jax.nn.sigmoid(gates[:, Hp:2 * Hp])
        g_g = jnp.tanh(gates[:, 2 * Hp:3 * Hp])
        o_g = jax.nn.sigmoid(gates[:, 3 * Hp:4 * Hp])
        c_new = f_g * c + i_g * g_g
        h_new = o_g * jnp.tanh(c_new)
        hbuf_ref[pl.ds(row, Bp), :] = h_new.astype(hbuf_ref.dtype)
        return h_new, c_new

    h_fin, c_fin = jax.lax.fori_loop(0, t_chunk, step,
                                     (h_ref[...], c_ref[...]),
                                     unroll=min(8, t_chunk))
    h_ref[...] = h_fin
    c_ref[...] = c_fin

    # Fused epilogue: next stage's row-GEMM over the whole chunk (t_chunk*Bp rows).
    hseq = hbuf_ref[...]                                   # (t_chunk*Bp, Hp) bf16
    if head:
        z = jnp.dot(hseq, w1_ref[...],
                    preferred_element_type=jnp.float32) + b1_ref[...]
        z = jnp.maximum(z, 0.0).astype(jnp.bfloat16)       # act='relu'
        y = jnp.dot(z, w2_ref[...],
                    preferred_element_type=jnp.float32) + b2_ref[...]
    else:
        y = jnp.dot(hseq, wp_ref[...],
                    preferred_element_type=jnp.float32) + bp_ref[...]
    out_ref[...] = y.astype(out_ref.dtype)


def _lstm_fused(xg, whh, post, *, Hp, Bp, t_chunk, out_cols, out_dtype, head,
                single_buffer, vmem_limit):
    """xg: (Tp*Bp, 4*Hp) bf16 -> (Tp*Bp, out_cols) fused-epilogue output."""
    TB = xg.shape[0]
    G = 4 * Hp
    rows = t_chunk * Bp
    n_chunks = TB // rows

    def const_spec(shape):
        imap = lambda i: (0, 0)
        if single_buffer:
            return pl.BlockSpec(shape, imap, pipeline_mode=pl.Buffered(1))
        return pl.BlockSpec(shape, imap)

    in_specs = ([pl.BlockSpec((rows, G), lambda i: (i, 0)),
                 const_spec(whh.shape)]
                + [const_spec(p.shape) for p in post])

    kernel = functools.partial(_lstm_fused_kernel, hidden_p=Hp, batch=Bp,
                               t_chunk=t_chunk, head=head)

    return pl.pallas_call(
        kernel,
        out_shape=jax.ShapeDtypeStruct((TB, out_cols), out_dtype),
        grid_spec=pltpu.PrefetchScalarGridSpec(
            num_scalar_prefetch=0,
            grid=(n_chunks,),
            in_specs=in_specs,
            out_specs=pl.BlockSpec((rows, out_cols), lambda i: (i, 0)),
            scratch_shapes=[pltpu.VMEM((rows, Hp), jnp.bfloat16),   # h chunk
                            pltpu.VMEM((Bp, Hp), jnp.float32),      # h state
                            pltpu.VMEM((Bp, Hp), jnp.float32)],     # c state
        ),
        compiler_params=pltpu.CompilerParams(
            dimension_semantics=("arbitrary",),   # sequential: state carries over
            vmem_limit_bytes=vmem_limit),
    )(xg, whh, *post)


# ------------------------------- weight packing -------------------------------
def _pack_params(params, H, Hp, Op):
    """Gate-lane-pad (H -> Hp per gate), lane-pad the head output, cast to bf16."""
    def gate_pad(w):                      # (K, 4H) -> (K, 4Hp), zeros in padding
        k = w.shape[0]
        w4 = jnp.pad(w.reshape(k, 4, H), ((0, 0), (0, 0), (0, Hp - H)))
        return w4.reshape(k, 4 * Hp)

    def row_pad(w, rows):
        return jnp.pad(w, ((0, rows - w.shape[0]), (0, 0)))

    bf = lambda w: w.astype(jnp.bfloat16)
    out_pad = Op - params["wl2"].shape[1]
    return {
        "wih1": bf(gate_pad(params["wih1"])),
        "b1": gate_pad(params["b1"]),                       # biases stay f32
        "whh1": bf(row_pad(gate_pad(params["whh1"]), Hp)),
        "wih2": bf(row_pad(gate_pad(params["wih2"]), Hp)),
        "b2": gate_pad(params["b2"]),
        "whh2": bf(row_pad(gate_pad(params["whh2"]), Hp)),
        "wl1": bf(row_pad(params["wl1"], Hp)),
        "bl1": params["bl1"],
        "wl2": bf(jnp.pad(params["wl2"], ((0, 0), (0, out_pad)))),
        "bl2": jnp.pad(params["bl2"], ((0, 0), (0, out_pad))),
    }


# ----------------------------------- forward -----------------------------------
def deep_lstm_forward(seq, params):
    """seq: (B, input_dim, T) float32 -> (B, output_dim, T) float32."""
    try:
        return _forward(seq, params, single_buffer=True)
    except Exception:
        # TODO(synk): pipeline_mode=pl.Buffered(1) unsupported on this JAX build;
        # fall back to default double-buffered constant weight blocks.
        return _forward(seq, params, single_buffer=False)


def _forward(seq, params, *, single_buffer):
    B, D_in, T = seq.shape
    H = params["whh1"].shape[0]
    out_dim = params["wl2"].shape[1]
    ff = params["wl1"].shape[1]
    Hp = _round_up(H, 128)                 # gate lane slot (lane-aligned gates)
    Op = _round_up(out_dim, 128)           # lane-dense head output
    Bp = _round_up(max(B, 8), 8)           # f32 sublane granularity

    # Generation-aware budgets (v7x: 64 MiB VMEM; v5e/v6e: 128 MiB).
    cap = _vmem_capacity_bytes()
    vmem_limit = int(min(max(cap * 3 // 4, 32 * 1024 * 1024), 128 * 1024 * 1024))
    budget = cap // 2                      # recurrence-pipeline working-set budget
    block_m = 512 if cap >= 96 * 1024 * 1024 else 256

    # Pick t_chunk from the VMEM budget, then split T as evenly as possible so at
    # most n_chunks-1 padded (wasted serial) timesteps exist.
    fixed = (Hp * 4 * Hp * 2                                        # whh (bf16)
             + max(Hp * 4 * Hp * 2 + 4 * Hp * 4,                    # wih2 + b2
                   Hp * ff * 2 + ff * 4 + ff * Op * 2 + Op * 4)     # head weights
             + 2 * Bp * Hp * 4)                                     # h/c scratch
    per_t = Bp * (2 * (4 * Hp) * 2        # xg slab (bf16), double-buffered
                  + 2 * (4 * Hp) * 2      # worst-case output slab, double-buffered
                  + Hp * 2)               # h-chunk scratch (bf16)
    t_max = int(max(1, min((budget - fixed) // per_t, 256, T)))
    n_chunks = -(-T // t_max)
    t_chunk = -(-T // n_chunks)
    Tp = n_chunks * t_chunk

    pk = _pack_params(params, H, Hp, Op)

    # Time-major rows (row = t*Bp + b): all kernel blocks are 2-D and lane-dense.
    x = jnp.transpose(seq, (2, 0, 1))                              # (T, B, D_in)
    x = jnp.pad(x, ((0, Tp - T), (0, Bp - B), (0, 0)))
    x = x.reshape(Tp * Bp, D_in).astype(jnp.bfloat16)

    # Hoisted layer-1 input projection: one big row-parallel GEMM.
    xg1 = _dense(x, pk["wih1"], pk["b1"], block_m=block_m, block_n=512,
                 out_dtype=jnp.bfloat16, single_buffer=single_buffer,
                 vmem_limit=vmem_limit)

    # Layer-1 recurrence; epilogue emits layer-2's input gates directly (no h1
    # HBM round trip).
    xg2 = _lstm_fused(xg1, pk["whh1"], (pk["wih2"], pk["b2"]),
                      Hp=Hp, Bp=Bp, t_chunk=t_chunk, out_cols=4 * Hp,
                      out_dtype=jnp.bfloat16, head=False,
                      single_buffer=single_buffer, vmem_limit=vmem_limit)

    # Layer-2 recurrence; epilogue is the fused Linear->ReLU->Linear head.
    y = _lstm_fused(xg2, pk["whh2"],
                    (pk["wl1"], pk["bl1"], pk["wl2"], pk["bl2"]),
                    Hp=Hp, Bp=Bp, t_chunk=t_chunk, out_cols=Op,
                    out_dtype=jnp.float32, head=True,
                    single_buffer=single_buffer, vmem_limit=vmem_limit)

    y = y.reshape(Tp, Bp, Op)[:T, :B, :out_dim]    # drop time/batch/lane padding
    return jnp.transpose(y, (1, 2, 0))             # (B, out_dim, T)


# ------------------------------------ params ------------------------------------
def init_params(key, input_dim, output_dim, hidden_dim, ff_dim=256):
    """Deterministic init mirroring PyTorch default uniform(-1/sqrt(fan), +)."""
    ks = jax.random.split(key, 16)
    u = lambda k, shape, bound: jax.random.uniform(
        k, shape, jnp.float32, minval=-bound, maxval=bound)
    kl = 1.0 / jnp.sqrt(hidden_dim)
    k1 = 1.0 / jnp.sqrt(hidden_dim)
    k2 = 1.0 / jnp.sqrt(ff_dim)

    # LSTM weights stored pre-transposed: x @ W_ih^T  ->  x @ wih  (D_in, 4H)
    return {
        "wih1": u(ks[0], (input_dim, 4 * hidden_dim), kl),
        "whh1": u(ks[1], (hidden_dim, 4 * hidden_dim), kl),
        "b1": (u(ks[2], (4 * hidden_dim,), kl)
               + u(ks[3], (4 * hidden_dim,), kl)).reshape(1, -1),   # b_ih + b_hh
        "wih2": u(ks[4], (hidden_dim, 4 * hidden_dim), kl),
        "whh2": u(ks[5], (hidden_dim, 4 * hidden_dim), kl),
        "b2": (u(ks[6], (4 * hidden_dim,), kl)
               + u(ks[7], (4 * hidden_dim,), kl)).reshape(1, -1),
        "wl1": u(ks[8], (hidden_dim, ff_dim), k1),
        "bl1": u(ks[9], (ff_dim,), k1).reshape(1, -1),
        "wl2": u(ks[10], (ff_dim, output_dim), k2),
        "bl2": u(ks[11], (output_dim,), k2).reshape(1, -1),
    }


# ----------------- pure-JAX f32 reference for correctness checking -----------------
def _lstm_layer_ref(x, wih, whh, b):
    B = x.shape[0]
    H = whh.shape[0]

    def step(carry, xt):
        h, c = carry
        gates = xt @ wih + h @ whh + b
        i = jax.nn.sigmoid(gates[:, 0:H])
        f = jax.nn.sigmoid(gates[:, H:2 * H])
        g = jnp.tanh(gates[:, 2 * H:3 * H])
        o = jax.nn.sigmoid(gates[:, 3 * H:4 * H])
        c = f * c + i * g
        h = o * jnp.tanh(c)
        return (h, c), h

    init = (jnp.zeros((B, H), jnp.float32), jnp.zeros((B, H), jnp.float32))
    _, hs = jax.lax.scan(step, init, jnp.transpose(x, (1, 0, 2)))
    return jnp.transpose(hs, (1, 0, 2))


def deep_lstm_reference(seq, params):
    x = jnp.transpose(seq, (0, 2, 1))
    h1 = _lstm_layer_ref(x, params["wih1"], params["whh1"], params["b1"])
    h2 = _lstm_layer_ref(h1, params["wih2"], params["whh2"], params["b2"])
    z = jnp.maximum(h2 @ params["wl1"] + params["bl1"], 0.0)
    y = z @ params["wl2"] + params["bl2"]
    return jnp.transpose(y, (0, 2, 1))


if __name__ == "__main__":
    B, input_dim, T = 2, 4, 8
    hidden_dim, output_dim = 32, 4

    key = jax.random.PRNGKey(0)
    k_param, k_data = jax.random.split(key)
    params = init_params(k_param, input_dim, output_dim, hidden_dim)

    seq = jax.random.normal(k_data, (B, input_dim, T), jnp.float32)  # (B, C_in, T)

    out = jax.block_until_ready(deep_lstm_forward(seq, params))
    assert out.shape == (B, output_dim, T), out.shape

    ref = jax.block_until_ready(deep_lstm_reference(seq, params))
    # bf16 weight/activation streams (f32 accumulation) vs f32 reference.
    err = float(jnp.max(jnp.abs(out - ref)))
    assert err < 2e-2, err

    print("KERNEL_OK")
</pallas_src>

<mosaic_0001>
module attributes {stable_mosaic.version = 11 : i64} {
  func.func @_dense_kernel(%arg0: i32, %arg1: i32, %arg2: memref<64x4xbf16, #tpu.memory_space<vmem>>, %arg3: memref<4x512xbf16, #tpu.memory_space<vmem>>, %arg4: memref<1x512xf32, #tpu.memory_space<vmem>>, %arg5: memref<64x512xbf16, #tpu.memory_space<vmem>>) attributes {dimension_semantics = [#tpu.dimension_semantics<parallel>, #tpu.dimension_semantics<parallel>], iteration_bounds = array<i64: 1, 1>, scalar_prefetch = 0 : i64, scratch_operands = 0 : i64, tpu.core_type = #tpu.core_type<tc>, window_params = [{transform_indices = @transform_0, window_bounds = array<i64: 64, 4>}, {pipeline_mode = #tpu.pipeline_mode<synchronous>, transform_indices = @transform_1, window_bounds = array<i64: 4, 512>}, {pipeline_mode = #tpu.pipeline_mode<synchronous>, transform_indices = @transform_2, window_bounds = array<i64: 1, 512>}, {transform_indices = @transform_3, window_bounds = array<i64: 64, 512>}]} {
    %c0 = arith.constant 0 : index
    %c0_0 = arith.constant 0 : index
    %0 = vector.load %arg2[%c0, %c0_0] : memref<64x4xbf16, #tpu.memory_space<vmem>>, vector<64x4xbf16>
    %c0_1 = arith.constant 0 : index
    %c0_2 = arith.constant 0 : index
    %1 = vector.load %arg3[%c0_1, %c0_2] : memref<4x512xbf16, #tpu.memory_space<vmem>>, vector<4x512xbf16>
    %cst = arith.constant dense<0.000000e+00> : vector<64x512xf32>
    %2 = tpu.matmul %0, %1, %cst {dimension_numbers = #tpu.dot_dimension_numbers<[1], [0], [0], [1], [0, 0, 1, 1], [], []>} : vector<64x4xbf16>, vector<4x512xbf16>, vector<64x512xf32> -> vector<64x512xf32>
    %c0_3 = arith.constant 0 : index
    %c0_4 = arith.constant 0 : index
    %3 = vector.load %arg4[%c0_3, %c0_4] : memref<1x512xf32, #tpu.memory_space<vmem>>, vector<1x512xf32>
    %4 = vector.broadcast %3 : vector<1x512xf32> to vector<64x512xf32>
    %5 = arith.addf %2, %4 : vector<64x512xf32>
    %6 = arith.truncf %5 : vector<64x512xf32> to vector<64x512xbf16>
    %c0_5 = arith.constant 0 : index
    %c0_6 = arith.constant 0 : index
    %7 = vector.load %arg5[%c0_5, %c0_6] : memref<64x512xbf16, #tpu.memory_space<vmem>>, vector<64x512xbf16>
    tpu.vector_store %arg5[%c0_5, %c0_6], %6 {strides = array<i32>} : memref<64x512xbf16, #tpu.memory_space<vmem>>, vector<64x512xbf16>,
    return
  }
  func.func @transform_0(%arg0: i32, %arg1: i32) -> (i32, i32) {
    %c0_i32 = arith.constant 0 : i32
    %c0_i32_0 = arith.constant 0 : i32
    return %arg0, %c0_i32 : i32, i32
  }
  func.func @transform_1(%arg0: i32, %arg1: i32) -> (i32, i32) {
    %c0_i32 = arith.constant 0 : i32
    %c0_i32_0 = arith.constant 0 : i32
    return %c0_i32, %arg1 : i32, i32
  }
  func.func @transform_2(%arg0: i32, %arg1: i32) -> (i32, i32) {
    %c0_i32 = arith.constant 0 : i32
    %c0_i32_0 = arith.constant 0 : i32
    return %c0_i32, %arg1 : i32, i32
  }
  func.func @transform_3(%arg0: i32, %arg1: i32) -> (i32, i32) {
    %c0_i32 = arith.constant 0 : i32
    return %arg0, %arg1 : i32, i32
  }
}

module attributes {stable_mosaic.version = 11 : i64} {
  func.func @_dense_kernel(%arg0: i32, %arg1: i32, %arg2: memref<64x4xbf16, #tpu.memory_space<vmem>>, %arg3: memref<4x512xbf16, #tpu.memory_space<vmem>>, %arg4: memref<1x512xf32, #tpu.memory_space<vmem>>, %arg5: memref<64x512xbf16, #tpu.memory_space<vmem>>) attributes {dimension_semantics = [#tpu.dimension_semantics<parallel>, #tpu.dimension_semantics<parallel>], iteration_bounds = array<i64: 1, 1>, scalar_prefetch = 0 : i64, scratch_operands = 0 : i64, tpu.core_type = #tpu.core_type<tc>, window_params = [{transform_indices = @transform_0, window_bounds = array<i64: 64, 4>}, {transform_indices = @transform_1, window_bounds = array<i64: 4, 512>}, {transform_indices = @transform_2, window_bounds = array<i64: 1, 512>}, {transform_indices = @transform_3, window_bounds = array<i64: 64, 512>}]} {
    %c0 = arith.constant 0 : index
    %c0_0 = arith.constant 0 : index
    %0 = vector.load %arg2[%c0, %c0_0] : memref<64x4xbf16, #tpu.memory_space<vmem>>, vector<64x4xbf16>
    %c0_1 = arith.constant 0 : index
    %c0_2 = arith.constant 0 : index
    %1 = vector.load %arg3[%c0_1, %c0_2] : memref<4x512xbf16, #tpu.memory_space<vmem>>, vector<4x512xbf16>
    %cst = arith.constant dense<0.000000e+00> : vector<64x512xf32>
    %2 = tpu.matmul %0, %1, %cst {dimension_numbers = #tpu.dot_dimension_numbers<[1], [0], [0], [1], [0, 0, 1, 1], [], []>} : vector<64x4xbf16>, vector<4x512xbf16>, vector<64x512xf32> -> vector<64x512xf32>
    %c0_3 = arith.constant 0 : index
    %c0_4 = arith.constant 0 : index
    %3 = vector.load %arg4[%c0_3, %c0_4] : memref<1x512xf32, #tpu.memory_space<vmem>>, vector<1x512xf32>
    %4 = vector.broadcast %3 : vector<1x512xf32> to vector<64x512xf32>
    %5 = arith.addf %2, %4 : vector<64x512xf32>
    %6 = arith.truncf %5 : vector<64x512xf32> to vector<64x512xbf16>
    %c0_5 = arith.constant 0 : index
    %c0_6 = arith.constant 0 : index
    %7 = vector.load %arg5[%c0_5, %c0_6] : memref<64x512xbf16, #tpu.memory_space<vmem>>, vector<64x512xbf16>
    tpu.vector_store %arg5[%c0_5, %c0_6], %6 {strides = array<i32>} : memref<64x512xbf16, #tpu.memory_space<vmem>>, vector<64x512xbf16>,
    return
  }
  func.func @transform_0(%arg0: i32, %arg1: i32) -> (i32, i32) {
    %c0_i32 = arith.constant 0 : i32
    %c0_i32_0 = arith.constant 0 : i32
    return %arg0, %c0_i32 : i32, i32
  }
  func.func @transform_1(%arg0: i32, %arg1: i32) -> (i32, i32) {
    %c0_i32 = arith.constant 0 : i32
    %c0_i32_0 = arith.constant 0 : i32
    return %c0_i32, %arg1 : i32, i32
  }
  func.func @transform_2(%arg0: i32, %arg1: i32) -> (i32, i32) {
    %c0_i32 = arith.constant 0 : i32
    %c0_i32_0 = arith.constant 0 : i32
    return %c0_i32, %arg1 : i32, i32
  }
  func.func @transform_3(%arg0: i32, %arg1: i32) -> (i32, i32) {
    %c0_i32 = arith.constant 0 : i32
    return %arg0, %arg1 : i32, i32
  }
}

</mosaic_0001>

<bundles_post_ra>
// kernel: tpu_custom_call.1
= control target key start
LH: loop header
LB: loop body
LE: loop exit
PB: predicated region body
PF: predicated region fallthrough
CT: control target
= control target key end

     0   :  { %v27_v1 = vlaneseq  ;;  %v465_v2 = vmov 1983009808   ;;  %v466_v4 = vmov 0   ;;  %s568_s0 = inlined_call_operand.vmem [shape: bf16[64,4], index: 0, kind: input, shape index: {}]   ;;  %s569_s1 = inlined_call_operand.vmem [shape: bf16[4,512], index: 1, kind: input, shape index: {}]   ;;  %s570_s2 = inlined_call_operand.vmem [shape: f32[1,512], index: 2, kind: input, shape index: {}]   ;;  %s571_s3 = inlined_call_operand.hbm [shape: bf16[64,512], index: 3, kind: output, shape index: {}]  }
   0x1   :  { %v24_v0 = vld [vmem:[%s569_s1] sm:$0xff]  ;;  %v70_v3 = vunpack.c.l.s4 %v465_v2  ;;  %143 = vmatprep.mubr.bf16.mxu0 %v466_v4  ;;  %216 = vmatprep.mubr.bf16.mxu1 %v466_v4 }
   0x2   :  { %v28_v5 = vshrl.u32 %v27_v1, 7  ;;  %v68_v7 = vcombine.high %v24_v0, %v24_v0 }
   0x3   :  { %v71_v6 = vunpack.c.0.s8 %v70_v3 }
   0x5   :  { %v74_v8 = vsub.s32 %v71_v6, %v28_v5 }
   0x6   :  { %8 = vsyncpa [#allocation3], 0  ;;  %vm98_vm0 = vcmask 1041408   ;;  %v437_v15 = vld [vmem:[%s568_s0] sm:$0xff]   ;;  %vm85_vm1 = vcmask 31744   ;;  %v438_v16 = vld [vmem:[%s568_s0 + $0x8] sm:$0xff]  }
   0x7   :  { %v75_v9 = vrot.slane %v24_v0, %v74_v8  ;;  %v82_v10 = vrot.slane %v68_v7, %v74_v8  ;;  %v439_v17 = vld [vmem:[%s568_s0 + $0x10] sm:$0xff]   ;;  %v440_v18 = vld [vmem:[%s568_s0 + $0x18] sm:$0xff]   ;;  %v29_v19 = vsub.s32 0, %v28_v5  ;;  %v37_v20 = vsub.s32 2, %v28_v5  ;;  %v25_v21 = vld [vmem:[%s570_s2] sm:$0xf] }
   0x8   :  { %v33_v22 = vsub.s32 1, %v28_v5  ;;  %v41_v23 = vsub.s32 3, %v28_v5  ;;  %s467_s0 = smov [#allocation2]  }
   0x9   :  { %v83_v11 = vcombine.high %v75_v9, %v75_v9  ;;  %v84_v12 = vcombine.high %v82_v10, %v82_v10  ;;  %v100_v13 = vsel %vm98_vm0, %v75_v9, 0  ;;  %v106_v14 = vsel %vm98_vm0, %v82_v10, 0  ;;  %s374_s2 = sshll.u32 %s467_s0, 4  ;;  %s375_s2 = int_to_ptr.vmem [resolvable:$true] %s374_s2 }
   0xa   :  { %v516_v24 = vrot.slane %v25_v21, %v29_v19  ;;  %v518_v25 = vrot.slane %v25_v21, %v37_v20  ;;  %v520_v26 = vrot.slane %v25_v21, %v33_v22  ;;  %v522_v27 = vrot.slane %v25_v21, %v41_v23  ;;  %s441_s23 = scalar_lea.vmem %s375_s2, 2048  ;;  %p446_p1 = scmp.lt.s32.totalorder %s375_s2, %s375_s2 }
   0xb   :  { %389 = vmatprep.subr.msk.bf16.mxu0 %vm98_vm0, %v83_v11  ;;  %394 = vmatprep.subr.msk.bf16.mxu1 %vm98_vm0, %v84_v12  ;;  %p442_p0 = scmp.ne.s32.totalorder %s375_s2, %s441_s23  ;;  %p447_p2 = scmp.lt.s32.totalorder %s441_s23, %s441_s23 }
   0xc   :  { %112 = vmatpush1.bf16.msra.mxu0 %v100_v13  ;;  %185 = vmatpush1.bf16.msra.mxu1 %v106_v14 }
   0xd   :  { %p448_p3 = por %p447_p2, %p446_p1 }
   0xf   :  { %390 = vmatmul.mubr.msk.bf16.vlgmr.msra.gmra.mrb[0].mxu0 %vm85_vm1, %v437_v15  ;;  %395 = vmatmul.mubr.msk.bf16.vlgmr.msra.gmra.mrb[0].mxu1 %vm85_vm1, %v437_v15  ;;  %p449_p4 = pnand %p448_p3, %p442_p0 }
  0x10   :  { %153 = vmatprep.mubr.bf16.mxu0 %v466_v4  ;;  %226 = vmatprep.mubr.bf16.mxu1 %v466_v4 }
  0x17   :  { %391 = vmatmul.mubr.msk.bf16.gmra.mrb[4].mxu0 %vm85_vm1, %v438_v16  ;;  %396 = vmatmul.mubr.msk.bf16.gmra.mrb[4].mxu1 %vm85_vm1, %v438_v16 }
  0x18   :  { %163 = vmatprep.mubr.bf16.mxu0 %v466_v4  ;;  %236 = vmatprep.mubr.bf16.mxu1 %v466_v4 }
  0x1f   :  { %392 = vmatmul.mubr.msk.bf16.gmra.mrb[8].mxu0 %vm85_vm1, %v439_v17  ;;  %397 = vmatmul.mubr.msk.bf16.gmra.mrb[8].mxu1 %vm85_vm1, %v439_v17 }
  0x20   :  { %173 = vmatprep.mubr.bf16.mxu0 %v466_v4  ;;  %246 = vmatprep.mubr.bf16.mxu1 %v466_v4 }
  0x27   :  { %393 = vmatmul.mubr.msk.bf16.gmra.mrb[12].mxu0 %vm85_vm1, %v440_v18  ;;  %398 = vmatmul.mubr.msk.bf16.gmra.mrb[12].mxu1 %vm85_vm1, %v440_v18 }
  0xe2   :  { %v145_v28 = vpop.f32.mrb[0].mxu0  ;;  %v218_v29 = vpop.f32.mrb[0].mxu1 }
  0xe3   :  { %v146_v30 = vadd.f32 %v145_v28, %v516_v24  ;;  %v219_v31 = vadd.f32 %v218_v29, %v518_v25  ;;  %v147_v32 = vpop.f32.mrb[1].mxu0  ;;  %v220_v33 = vpop.f32.mrb[1].mxu1 }
  0xe4   :  { %v148_v34 = vadd.f32 %v147_v32, %v520_v26  ;;  %v221_v35 = vadd.f32 %v220_v33, %v522_v27  ;;  %v149_v36 = vpop.f32.mrb[2].mxu0  ;;  %v222_v37 = vpop.f32.mrb[2].mxu1 }
  0xe5   :  { %v150_v38 = vadd.f32 %v149_v36, %v516_v24  ;;  %v223_v39 = vadd.f32 %v222_v37, %v518_v25  ;;  %v151_v40 = vpop.f32.mrb[3].mxu0  ;;  %v224_v41 = vpop.f32.mrb[3].mxu1 }
  0xe6   :  { %v415_v42 = vpack.c.bf16 %v148_v34, %v146_v30  ;;  %v416_v43 = vpack.c.bf16 %v221_v35, %v219_v31  ;;  %v152_v44 = vadd.f32 %v151_v40, %v520_v26  ;;  %v225_v45 = vadd.f32 %v224_v41, %v522_v27 }
  0xe8   :  { %353 = vst [vmem:[#allocation2] sm:$0xff] %v415_v42  ;;  %354 = vst [vmem:[#allocation2 + $0x8] sm:$0xff] %v416_v43  ;;  %v417_v46 = vpack.c.bf16 %v152_v44, %v150_v38  ;;  %v418_v47 = vpack.c.bf16 %v225_v45, %v223_v39 }
  0xea   :  { %355 = vst [vmem:[#allocation2 + $0x10] sm:$0xff] %v417_v46  ;;  %356 = vst [vmem:[#allocation2 + $0x18] sm:$0xff] %v418_v47  ;;  %v155_v48 = vpop.f32.mrb[4].mxu0  ;;  %v228_v49 = vpop.f32.mrb[4].mxu1 }
  0xeb   :  { %v156_v50 = vadd.f32 %v155_v48, %v516_v24  ;;  %v229_v51 = vadd.f32 %v228_v49, %v518_v25  ;;  %v157_v52 = vpop.f32.mrb[5].mxu0  ;;  %v230_v53 = vpop.f32.mrb[5].mxu1 }
  0xec   :  { %v158_v54 = vadd.f32 %v157_v52, %v520_v26  ;;  %v231_v55 = vadd.f32 %v230_v53, %v522_v27  ;;  %v159_v56 = vpop.f32.mrb[6].mxu0  ;;  %v232_v57 = vpop.f32.mrb[6].mxu1 }
  0xed   :  { %v160_v58 = vadd.f32 %v159_v56, %v516_v24  ;;  %v233_v59 = vadd.f32 %v232_v57, %v518_v25  ;;  %v161_v60 = vpop.f32.mrb[7].mxu0  ;;  %v234_v61 = vpop.f32.mrb[7].mxu1 }
  0xee   :  { %v419_v62 = vpack.c.bf16 %v158_v54, %v156_v50  ;;  %v420_v63 = vpack.c.bf16 %v231_v55, %v229_v51  ;;  %v162_v0 = vadd.f32 %v161_v60, %v520_v26  ;;  %v235_v1 = vadd.f32 %v234_v61, %v522_v27 }
  0xf0   :  { %357 = vst [vmem:[#allocation2 + $0x20] sm:$0xff] %v419_v62  ;;  %358 = vst [vmem:[#allocation2 + $0x28] sm:$0xff] %v420_v63  ;;  %v421_v2 = vpack.c.bf16 %v162_v0, %v160_v58  ;;  %v422_v3 = vpack.c.bf16 %v235_v1, %v233_v59 }
  0xf2   :  { %359 = vst [vmem:[#allocation2 + $0x30] sm:$0xff] %v421_v2  ;;  %360 = vst [vmem:[#allocation2 + $0x38] sm:$0xff] %v422_v3  ;;  %v165_v4 = vpop.f32.mrb[8].mxu0  ;;  %v238_v5 = vpop.f32.mrb[8].mxu1 }
  0xf3   :  { %v166_v6 = vadd.f32 %v165_v4, %v516_v24  ;;  %v239_v7 = vadd.f32 %v238_v5, %v518_v25  ;;  %v167_v8 = vpop.f32.mrb[9].mxu0  ;;  %v240_v9 = vpop.f32.mrb[9].mxu1 }
  0xf4   :  { %v168_v10 = vadd.f32 %v167_v8, %v520_v26  ;;  %v241_v11 = vadd.f32 %v240_v9, %v522_v27  ;;  %v169_v12 = vpop.f32.mrb[10].mxu0  ;;  %v242_v13 = vpop.f32.mrb[10].mxu1 }
  0xf5   :  { %v170_v14 = vadd.f32 %v169_v12, %v516_v24  ;;  %v243_v15 = vadd.f32 %v242_v13, %v518_v25  ;;  %v171_v16 = vpop.f32.mrb[11].mxu0  ;;  %v244_v17 = vpop.f32.mrb[11].mxu1 }
  0xf6   :  { %v423_v18 = vpack.c.bf16 %v168_v10, %v166_v6  ;;  %v424_v19 = vpack.c.bf16 %v241_v11, %v239_v7  ;;  %v172_v20 = vadd.f32 %v171_v16, %v520_v26  ;;  %v245_v21 = vadd.f32 %v244_v17, %v522_v27 }
  0xf8   :  { %361 = vst [vmem:[#allocation2 + $0x40] sm:$0xff] %v423_v18  ;;  %362 = vst [vmem:[#allocation2 + $0x48] sm:$0xff] %v424_v19  ;;  %v425_v22 = vpack.c.bf16 %v172_v20, %v170_v14  ;;  %v426_v23 = vpack.c.bf16 %v245_v21, %v243_v15 }
  0xfa   :  { %363 = vst [vmem:[#allocation2 + $0x50] sm:$0xff] %v425_v22  ;;  %364 = vst [vmem:[#allocation2 + $0x58] sm:$0xff] %v426_v23  ;;  %v175_v28 = vpop.f32.mrb[12].mxu0  ;;  %v248_v29 = vpop.f32.mrb[12].mxu1 }
  0xfb   :  { %v176_v30 = vadd.f32 %v175_v28, %v516_v24  ;;  %v249_v31 = vadd.f32 %v248_v29, %v518_v25  ;;  %v177_v32 = vpop.f32.mrb[13].mxu0  ;;  %v250_v33 = vpop.f32.mrb[13].mxu1 }
  0xfc   :  { %v178_v34 = vadd.f32 %v177_v32, %v520_v26  ;;  %v251_v35 = vadd.f32 %v250_v33, %v522_v27  ;;  %v179_v36 = vpop.f32.mrb[14].mxu0  ;;  %v252_v37 = vpop.f32.mrb[14].mxu1 }
  0xfd   :  { %v180_v38 = vadd.f32 %v179_v36, %v516_v24  ;;  %v253_v39 = vadd.f32 %v252_v37, %v518_v25  ;;  %v181_v40 = vpop.f32.mrb[15].mxu0  ;;  %v254_v41 = vpop.f32.mrb[15].mxu1 }
  0xfe   :  { %v427_v42 = vpack.c.bf16 %v178_v34, %v176_v30  ;;  %v428_v43 = vpack.c.bf16 %v251_v35, %v249_v31  ;;  %v182_v44 = vadd.f32 %v181_v40, %v520_v26  ;;  %v255_v45 = vadd.f32 %v254_v41, %v522_v27 }
 0x100   :  { %365 = vst [vmem:[#allocation2 + $0x60] sm:$0xff] %v427_v42  ;;  %366 = vst [vmem:[#allocation2 + $0x68] sm:$0xff] %v428_v43  ;;  %v429_v46 = vpack.c.bf16 %v182_v44, %v180_v38  ;;  %v430_v47 = vpack.c.bf16 %v255_v45, %v253_v39 }
 0x102   :  { %367 = vst [vmem:[#allocation2 + $0x70] sm:$0xff] %v429_v46  ;;  %368 = vst [vmem:[#allocation2 + $0x78] sm:$0xff] %v430_v47 }
 0x103   :  { %452 = shalt.err (!%p449_p4)
}
 0x104   :  { %s453_s26 = scalar_lea.hbm %s571_s3, 2048 }
 0x105   :  { %p454_p5 = scmp.ne.s32.totalorder %s571_s3, %s453_s26  ;;  %p457_p6 = scmp.lt.u32.totalorder %s453_s26, %s571_s3 }
 0x107   :  { %p459_p7 = pnand %p457_p6, %p454_p5 }
 0x109   :  { %462 = shalt.err (!%p459_p7)
}
 0x10a   :  { %s468_s4 = smov 256   ;;  %s469_s5 = smov 16  }
 0x10b   :  { %380 = dma.vmem_to_hbm [thread:$0]  %s375_s2, 2048, %s571_s3, [#allocation3], %s468_s4, %s468_s4, %s469_s5  }
 0x10c   :  { %463 = dma.done.wait [#allocation3], 2048  }
 0x10d   :  { %464 = vsyncadd [#allocation3], 4294965248 }
 0x10e   :  { %384 = vsyncpa [#allocation3], 1 }

// kernel: tpu_custom_call.1
= control target key start
LH: loop header
LB: loop body
LE: loop exit
PB: predicated region body
PF: predicated region fallthrough
CT: control target
= control target key end

     0   :  { %v27_v1 = vlaneseq  ;;  %v465_v2 = vmov 1983009808   ;;  %v466_v4 = vmov 0   ;;  %s568_s0 = inlined_call_operand.vmem [shape: bf16[64,4], index: 0, kind: input, shape index: {}]   ;;  %s569_s1 = inlined_call_operand.vmem [shape: bf16[4,512], index: 1, kind: input, shape index: {}]   ;;  %s570_s2 = inlined_call_operand.vmem [shape: f32[1,512], index: 2, kind: input, shape index: {}]   ;;  %s571_s3 = inlined_call_operand.hbm [shape: bf16[64,512], index: 3, kind: output, shape index: {}]  }
   0x1   :  { %v24_v0 = vld [vmem:[%s569_s1] sm:$0xff]  ;;  %v70_v3 = vunpack.c.l.s4 %v465_v2  ;;  %143 = vmatprep.mubr.bf16.mxu0 %v466_v4  ;;  %216 = vmatprep.mubr.bf16.mxu1 %v466_v4 }
   0x2   :  { %v28_v5 = vshrl.u32 %v27_v1, 7  ;;  %v68_v7 = vcombine.high %v24_v0, %v24_v0 }
   0x3   :  { %v71_v6 = vunpack.c.0.s8 %v70_v3 }
   0x5   :  { %v74_v8 = vsub.s32 %v71_v6, %v28_v5 }
   0x6   :  { %8 = vsyncpa [#allocation3], 0  ;;  %vm98_vm0 = vcmask 1041408   ;;  %v437_v15 = vld [vmem:[%s568_s0] sm:$0xff]   ;;  %vm85_vm1 = vcmask 31744   ;;  %v438_v16 = vld [vmem:[%s568_s0 + $0x8] sm:$0xff]  }
   0x7   :  { %v75_v9 = vrot.slane %v24_v0, %v74_v8  ;;  %v82_v10 = vrot.slane %v68_v7, %v74_v8  ;;  %v439_v17 = vld [vmem:[%s568_s0 + $0x10] sm:$0xff]   ;;  %v440_v18 = vld [vmem:[%s568_s0 + $0x18] sm:$0xff]   ;;  %v29_v19 = vsub.s32 0, %v28_v5  ;;  %v37_v20 = vsub.s32 2, %v28_v5  ;;  %v25_v21 = vld [vmem:[%s570_s2] sm:$0xf] }
   0x8   :  { %v33_v22 = vsub.s32 1, %v28_v5  ;;  %v41_v23 = vsub.s32 3, %v28_v5  ;;  %s467_s0 = smov [#allocation2]  }
   0x9   :  { %v83_v11 = vcombine.high %v75_v9, %v75_v9  ;;  %v84_v12 = vcombine.high %v82_v10, %v82_v10  ;;  %v100_v13 = vsel %vm98_vm0, %v75_v9, 0  ;;  %v106_v14 = vsel %vm98_vm0, %v82_v10, 0  ;;  %s374_s2 = sshll.u32 %s467_s0, 4  ;;  %s375_s2 = int_to_ptr.vmem [resolvable:$true] %s374_s2 }
   0xa   :  { %v516_v24 = vrot.slane %v25_v21, %v29_v19  ;;  %v518_v25 = vrot.slane %v25_v21, %v37_v20  ;;  %v520_v26 = vrot.slane %v25_v21, %v33_v22  ;;  %v522_v27 = vrot.slane %v25_v21, %v41_v23  ;;  %s441_s23 = scalar_lea.vmem %s375_s2, 2048  ;;  %p446_p1 = scmp.lt.s32.totalorder %s375_s2, %s375_s2 }
   0xb   :  { %389 = vmatprep.subr.msk.bf16.mxu0 %vm98_vm0, %v83_v11  ;;  %394 = vmatprep.subr.msk.bf16.mxu1 %vm98_vm0, %v84_v12  ;;  %p442_p0 = scmp.ne.s32.totalorder %s375_s2, %s441_s23  ;;  %p447_p2 = scmp.lt.s32.totalorder %s441_s23, %s441_s23 }
   0xc   :  { %112 = vmatpush1.bf16.msra.mxu0 %v100_v13  ;;  %185 = vmatpush1.bf16.msra.mxu1 %v106_v14 }
   0xd   :  { %p448_p3 = por %p447_p2, %p446_p1 }
   0xf   :  { %390 = vmatmul.mubr.msk.bf16.vlgmr.msra.gmra.mrb[0].mxu0 %vm85_vm1, %v437_v15  ;;  %395 = vmatmul.mubr.msk.bf16.vlgmr.msra.gmra.mrb[0].mxu1 %vm85_vm1, %v437_v15  ;;  %p449_p4 = pnand %p448_p3, %p442_p0 }
  0x10   :  { %153 = vmatprep.mubr.bf16.mxu0 %v466_v4  ;;  %226 = vmatprep.mubr.bf16.mxu1 %v466_v4 }
  0x17   :  { %391 = vmatmul.mubr.msk.bf16.gmra.mrb[4].mxu0 %vm85_vm1, %v438_v16  ;;  %396 = vmatmul.mubr.msk.bf16.gmra.mrb[4].mxu1 %vm85_vm1, %v438_v16 }
  0x18   :  { %163 = vmatprep.mubr.bf16.mxu0 %v466_v4  ;;  %236 = vmatprep.mubr.bf16.mxu1 %v466_v4 }
  0x1f   :  { %392 = vmatmul.mubr.msk.bf16.gmra.mrb[8].mxu0 %vm85_vm1, %v439_v17  ;;  %397 = vmatmul.mubr.msk.bf16.gmra.mrb[8].mxu1 %vm85_vm1, %v439_v17 }
  0x20   :  { %173 = vmatprep.mubr.bf16.mxu0 %v466_v4  ;;  %246 = vmatprep.mubr.bf16.mxu1 %v466_v4 }
  0x27   :  { %393 = vmatmul.mubr.msk.bf16.gmra.mrb[12].mxu0 %vm85_vm1, %v440_v18  ;;  %398 = vmatmul.mubr.msk.bf16.gmra.mrb[12].mxu1 %vm85_vm1, %v440_v18 }
  0xe2   :  { %v145_v28 = vpop.f32.mrb[0].mxu0  ;;  %v218_v29 = vpop.f32.mrb[0].mxu1 }
  0xe3   :  { %v146_v30 = vadd.f32 %v145_v28, %v516_v24  ;;  %v219_v31 = vadd.f32 %v218_v29, %v518_v25  ;;  %v147_v32 = vpop.f32.mrb[1].mxu0  ;;  %v220_v33 = vpop.f32.mrb[1].mxu1 }
  0xe4   :  { %v148_v34 = vadd.f32 %v147_v32, %v520_v26  ;;  %v221_v35 = vadd.f32 %v220_v33, %v522_v27  ;;  %v149_v36 = vpop.f32.mrb[2].mxu0  ;;  %v222_v37 = vpop.f32.mrb[2].mxu1 }
  0xe5   :  { %v150_v38 = vadd.f32 %v149_v36, %v516_v24  ;;  %v223_v39 = vadd.f32 %v222_v37, %v518_v25  ;;  %v151_v40 = vpop.f32.mrb[3].mxu0  ;;  %v224_v41 = vpop.f32.mrb[3].mxu1 }
  0xe6   :  { %v415_v42 = vpack.c.bf16 %v148_v34, %v146_v30  ;;  %v416_v43 = vpack.c.bf16 %v221_v35, %v219_v31  ;;  %v152_v44 = vadd.f32 %v151_v40, %v520_v26  ;;  %v225_v45 = vadd.f32 %v224_v41, %v522_v27 }
  0xe8   :  { %353 = vst [vmem:[#allocation2] sm:$0xff] %v415_v42  ;;  %354 = vst [vmem:[#allocation2 + $0x8] sm:$0xff] %v416_v43  ;;  %v417_v46 = vpack.c.bf16 %v152_v44, %v150_v38  ;;  %v418_v47 = vpack.c.bf16 %v225_v45, %v223_v39 }
  0xea   :  { %355 = vst [vmem:[#allocation2 + $0x10] sm:$0xff] %v417_v46  ;;  %356 = vst [vmem:[#allocation2 + $0x18] sm:$0xff] %v418_v47  ;;  %v155_v48 = vpop.f32.mrb[4].mxu0  ;;  %v228_v49 = vpop.f32.mrb[4].mxu1 }
  0xeb   :  { %v156_v50 = vadd.f32 %v155_v48, %v516_v24  ;;  %v229_v51 = vadd.f32 %v228_v49, %v518_v25  ;;  %v157_v52 = vpop.f32.mrb[5].mxu0  ;;  %v230_v53 = vpop.f32.mrb[5].mxu1 }
  0xec   :  { %v158_v54 = vadd.f32 %v157_v52, %v520_v26  ;;  %v231_v55 = vadd.f32 %v230_v53, %v522_v27  ;;  %v159_v56 = vpop.f32.mrb[6].mxu0  ;;  %v232_v57 = vpop.f32.mrb[6].mxu1 }
  0xed   :  { %v160_v58 = vadd.f32 %v159_v56, %v516_v24  ;;  %v233_v59 = vadd.f32 %v232_v57, %v518_v25  ;;  %v161_v60 = vpop.f32.mrb[7].mxu0  ;;  %v234_v61 = vpop.f32.mrb[7].mxu1 }
  0xee   :  { %v419_v62 = vpack.c.bf16 %v158_v54, %v156_v50  ;;  %v420_v63 = vpack.c.bf16 %v231_v55, %v229_v51  ;;  %v162_v0 = vadd.f32 %v161_v60, %v520_v26  ;;  %v235_v1 = vadd.f32 %v234_v61, %v522_v27 }
  0xf0   :  { %357 = vst [vmem:[#allocation2 + $0x20] sm:$0xff] %v419_v62  ;;  %358 = vst [vmem:[#allocation2 + $0x28] sm:$0xff] %v420_v63  ;;  %v421_v2 = vpack.c.bf16 %v162_v0, %v160_v58  ;;  %v422_v3 = vpack.c.bf16 %v235_v1, %v233_v59 }
  0xf2   :  { %359 = vst [vmem:[#allocation2 + $0x30] sm:$0xff] %v421_v2  ;;  %360 = vst [vmem:[#allocation2 + $0x38] sm:$0xff] %v422_v3  ;;  %v165_v4 = vpop.f32.mrb[8].mxu0  ;;  %v238_v5 = vpop.f32.mrb[8].mxu1 }
  0xf3   :  { %v166_v6 = vadd.f32 %v165_v4, %v516_v24  ;;  %v239_v7 = vadd.f32 %v238_v5, %v518_v25  ;;  %v167_v8 = vpop.f32.mrb[9].mxu0  ;;  %v240_v9 = vpop.f32.mrb[9].mxu1 }
  0xf4   :  { %v168_v10 = vadd.f32 %v167_v8, %v520_v26  ;;  %v241_v11 = vadd.f32 %v240_v9, %v522_v27  ;;  %v169_v12 = vpop.f32.mrb[10].mxu0  ;;  %v242_v13 = vpop.f32.mrb[10].mxu1 }
  0xf5   :  { %v170_v14 = vadd.f32 %v169_v12, %v516_v24  ;;  %v243_v15 = vadd.f32 %v242_v13, %v518_v25  ;;  %v171_v16 = vpop.f32.mrb[11].mxu0  ;;  %v244_v17 = vpop.f32.mrb[11].mxu1 }
  0xf6   :  { %v423_v18 = vpack.c.bf16 %v168_v10, %v166_v6  ;;  %v424_v19 = vpack.c.bf16 %v241_v11, %v239_v7  ;;  %v172_v20 = vadd.f32 %v171_v16, %v520_v26  ;;  %v245_v21 = vadd.f32 %v244_v17, %v522_v27 }
  0xf8   :  { %361 = vst [vmem:[#allocation2 + $0x40] sm:$0xff] %v423_v18  ;;  %362 = vst [vmem:[#allocation2 + $0x48] sm:$0xff] %v424_v19  ;;  %v425_v22 = vpack.c.bf16 %v172_v20, %v170_v14  ;;  %v426_v23 = vpack.c.bf16 %v245_v21, %v243_v15 }
  0xfa   :  { %363 = vst [vmem:[#allocation2 + $0x50] sm:$0xff] %v425_v22  ;;  %364 = vst [vmem:[#allocation2 + $0x58] sm:$0xff] %v426_v23  ;;  %v175_v28 = vpop.f32.mrb[12].mxu0  ;;  %v248_v29 = vpop.f32.mrb[12].mxu1 }
  0xfb   :  { %v176_v30 = vadd.f32 %v175_v28, %v516_v24  ;;  %v249_v31 = vadd.f32 %v248_v29, %v518_v25  ;;  %v177_v32 = vpop.f32.mrb[13].mxu0  ;;  %v250_v33 = vpop.f32.mrb[13].mxu1 }
  0xfc   :  { %v178_v34 = vadd.f32 %v177_v32, %v520_v26  ;;  %v251_v35 = vadd.f32 %v250_v33, %v522_v27  ;;  %v179_v36 = vpop.f32.mrb[14].mxu0  ;;  %v252_v37 = vpop.f32.mrb[14].mxu1 }
  0xfd   :  { %v180_v38 = vadd.f32 %v179_v36, %v516_v24  ;;  %v253_v39 = vadd.f32 %v252_v37, %v518_v25  ;;  %v181_v40 = vpop.f32.mrb[15].mxu0  ;;  %v254_v41 = vpop.f32.mrb[15].mxu1 }
  0xfe   :  { %v427_v42 = vpack.c.bf16 %v178_v34, %v176_v30  ;;  %v428_v43 = vpack.c.bf16 %v251_v35, %v249_v31  ;;  %v182_v44 = vadd.f32 %v181_v40, %v520_v26  ;;  %v255_v45 = vadd.f32 %v254_v41, %v522_v27 }
 0x100   :  { %365 = vst [vmem:[#allocation2 + $0x60] sm:$0xff] %v427_v42  ;;  %366 = vst [vmem:[#allocation2 + $0x68] sm:$0xff] %v428_v43  ;;  %v429_v46 = vpack.c.bf16 %v182_v44, %v180_v38  ;;  %v430_v47 = vpack.c.bf16 %v255_v45, %v253_v39 }
 0x102   :  { %367 = vst [vmem:[#allocation2 + $0x70] sm:$0xff] %v429_v46  ;;  %368 = vst [vmem:[#allocation2 + $0x78] sm:$0xff] %v430_v47 }
 0x103   :  { %452 = shalt.err (!%p449_p4)
}
 0x104   :  { %s453_s26 = scalar_lea.hbm %s571_s3, 2048 }
 0x105   :  { %p454_p5 = scmp.ne.s32.totalorder %s571_s3, %s453_s26  ;;  %p457_p6 = scmp.lt.u32.totalorder %s453_s26, %s571_s3 }
 0x107   :  { %p459_p7 = pnand %p457_p6, %p454_p5 }
 0x109   :  { %462 = shalt.err (!%p459_p7)
}
 0x10a   :  { %s468_s4 = smov 256   ;;  %s469_s5 = smov 16  }
 0x10b   :  { %380 = dma.vmem_to_hbm [thread:$0]  %s375_s2, 2048, %s571_s3, [#allocation3], %s468_s4, %s468_s4, %s469_s5  }
 0x10c   :  { %463 = dma.done.wait [#allocation3], 2048  }
 0x10d   :  { %464 = vsyncadd [#allocation3], 4294965248 }
 0x10e   :  { %384 = vsyncpa [#allocation3], 1 }

</bundles_post_ra>
